<compile_context>
chip_gen: v7x
topology: tpu7x:2x2x1
jax: 0.10.0
libtpu: 0.0.40
codegen_flags: <defaults>
</compile_context>

<pallas_src>
import math
from functools import partial

import jax
import jax.numpy as jnp
from jax.experimental import pallas as pl
from jax.experimental.pallas import tpu as pltpu


def _relative_position_bucket(neg, num_buckets, max_distance):
    """T5 bucket function. `neg` = -relative_position = (i - j), int32 array.

    Shared by the kernel and the pure-JAX reference so the math is identical.
    Divisions are folded into multiplications by precomputed reciprocals.
    """
    half = num_buckets // 2
    ret = jnp.where(neg < 0, half, 0).astype(jnp.int32)
    nabs = jnp.abs(neg)
    max_exact = half // 2
    is_small = nabs < max_exact
    inv_max_exact = 1.0 / float(max_exact)
    inv_log = 1.0 / math.log(max_distance / max_exact)
    # log() only matters on the "large" branch; clamp to >=1 so log(0) never
    # appears for elements that `is_small` masks out anyway (same semantics).
    nf = jnp.maximum(nabs, 1).astype(jnp.float32)
    val_if_large = max_exact + (
        jnp.log(nf * inv_max_exact) * inv_log * (half - max_exact)
    ).astype(jnp.int32)
    val_if_large = jnp.minimum(val_if_large, half - 1)
    return ret + jnp.where(is_small, nabs, val_if_large)


def _rel_pos_bias_kernel(emb_t_ref, out_ref, ext_ref, *, tile_i, n, heads,
                         num_buckets, max_distance, wpad):
    """emb_t_ref: (heads, num_buckets) f32 in VMEM (embedding table, transposed).
    out_ref:     (heads, tile_i, n)    f32 in VMEM (one i-tile of the output).
    ext_ref:     (heads, wpad)         f32 VMEM scratch (per-step Toeplitz table).
    """
    i0 = pl.program_id(0) * tile_i

    # --- Step 1: build the per-step diagonal table ---------------------------
    # ext[h, c] holds the bias for (i - j) == (i0 + tile_i - 1) - c, so that
    # out[h, i0+r, j] == ext[h, (tile_i-1-r) + j].  The dynamic grid offset i0
    # only enters as a scalar shift of the iota; no dynamic lane slicing needed.
    c = jax.lax.broadcasted_iota(jnp.int32, (heads, wpad), 1)
    neg = (i0 + tile_i - 1) - c                       # = i - j
    bucket = _relative_position_bucket(neg, num_buckets, max_distance)

    # Select-accumulate over buckets: one compare per bucket (shared across all
    # heads), one select against the per-head embedding column.  This runs on a
    # tiny (heads, wpad) array once per grid step — negligible vs. the output.
    ext = jnp.broadcast_to(emb_t_ref[:, 0:1], (heads, wpad))
    for b in range(1, num_buckets):
        ext = jnp.where(bucket == b, emb_t_ref[:, b:b + 1], ext)
    ext_ref[...] = ext

    # --- Step 2: Toeplitz fill ------------------------------------------------
    # Each output row is a static shifted window of the table; stored exactly
    # once, never read back.  Pure ld/st + lane-shift work, VALU idle.
    for r in range(tile_i):
        c0 = tile_i - 1 - r
        out_ref[:, r, :] = ext_ref[:, c0:c0 + n]


def _choose_tile_i(n, heads, max_block_bytes=12 << 20):
    """Pick an i-tile size: a multiple of 8 that divides n, small enough that
    the double-buffered (heads, tile_i, n) f32 output block stays within a
    12 MiB budget (safe on v7x's 64 MiB physical / 32 MiB scoped VMEM, roomy on
    v5e/v6e once vmem_limit_bytes is raised), preferring an even number of
    >= 2 grid steps so the 'parallel' axis shards evenly across v7x's two
    TensorCores."""
    cands = [t for t in (256, 128, 64, 32, 16, 8) if t < n and n % t == 0]
    for t in cands:                                    # even #tiles, fits budget
        if 2 * heads * t * n * 4 <= max_block_bytes and (n // t) % 2 == 0:
            return t
    for t in cands:                                    # >= 2 tiles, fits budget
        if 2 * heads * t * n * 4 <= max_block_bytes:
            return t
    return n  # block dim == full array dim is always legal (single grid step)


def relative_position_bias(emb, n, *, num_buckets=32, max_distance=128):
    """emb: (num_buckets, heads) f32 (the nn.Embedding weight).
    Returns (heads, n, n) f32, i.e. rearrange(values, 'i j h -> h i j')."""
    nb, heads = emb.shape
    assert nb == num_buckets
    emb_t = emb.T                                      # (heads, num_buckets), tiny

    tile_i = _choose_tile_i(n, heads)
    num_tiles = n // tile_i
    w = tile_i + n - 1
    wpad = ((w + 127) // 128) * 128                    # lane-aligned scratch width

    kernel = partial(_rel_pos_bias_kernel, tile_i=tile_i, n=n, heads=heads,
                     num_buckets=num_buckets, max_distance=max_distance,
                     wpad=wpad)
    return pl.pallas_call(
        kernel,
        out_shape=jax.ShapeDtypeStruct((heads, n, n), jnp.float32),
        grid=(num_tiles,),
        in_specs=[pl.BlockSpec((heads, num_buckets), lambda t: (0, 0))],
        out_specs=pl.BlockSpec((heads, tile_i, n), lambda t: (0, t, 0)),
        scratch_shapes=[pltpu.VMEM((heads, wpad), jnp.float32)],
        compiler_params=pltpu.CompilerParams(
            dimension_semantics=("parallel",),
            vmem_limit_bytes=32 << 20),
    )(emb_t)


def _reference(emb, n, *, num_buckets=32, max_distance=128):
    """Pure-JAX reference mirroring the PyTorch module."""
    q = jnp.arange(n, dtype=jnp.int32)
    k = jnp.arange(n, dtype=jnp.int32)
    rel_pos = k[None, :] - q[:, None]                  # (n, n)
    bucket = _relative_position_bucket(-rel_pos, num_buckets, max_distance)
    values = emb[bucket]                               # (n, n, heads)
    return jnp.transpose(values, (2, 0, 1))            # (heads, n, n)


if __name__ == "__main__":
    heads = 8
    num_buckets = 32
    max_distance = 128
    n = 16  # sequence length (static: output shape depends on it)

    # nn.Embedding(num_buckets, heads) weights, deterministic here.
    key = jax.random.PRNGKey(0)
    emb = jax.random.normal(key, (num_buckets, heads), dtype=jnp.float32)

    out = relative_position_bias(emb, n, num_buckets=num_buckets,
                                 max_distance=max_distance)
    out = jax.block_until_ready(out)

    ref = _reference(emb, n, num_buckets=num_buckets,
                     max_distance=max_distance)
    assert out.shape == (heads, n, n), out.shape
    assert jnp.allclose(out, ref, atol=1e-6), "mismatch vs reference"

    print("KERNEL_OK")
</pallas_src>

<mosaic_0001>
module attributes {stable_mosaic.version = 11 : i64} {
  func.func @_rel_pos_bias_kernel(%arg0: i32, %arg1: memref<8x32xf32, #tpu.memory_space<vmem>>, %arg2: memref<8x8x16xf32, #tpu.memory_space<vmem>>, %arg3: memref<8x128xf32, #tpu.memory_space<vmem>>) attributes {dimension_semantics = [#tpu.dimension_semantics<parallel>], iteration_bounds = array<i64: 2>, scalar_prefetch = 0 : i64, scratch_operands = 1 : i64, tpu.core_type = #tpu.core_type<tc>, window_params = [{pipeline_mode = #tpu.pipeline_mode<synchronous>, transform_indices = @transform_0, window_bounds = array<i64: 8, 32>}, {transform_indices = @transform_1, window_bounds = array<i64: 8, 8, 16>}]} {
    %c8_i32 = arith.constant 8 : i32
    %0 = arith.muli %arg0, %c8_i32 : i32
    %1 = tpu.iota {dimensions = array<i32: 1>} : vector<8x128xi32>
    %c8_i32_0 = arith.constant 8 : i32
    %2 = arith.addi %0, %c8_i32_0 : i32
    %c1_i32 = arith.constant 1 : i32
    %3 = arith.subi %2, %c1_i32 : i32
    %4 = vector.broadcast %3 : i32 to vector<8x128xi32>
    %5 = arith.subi %4, %1 : vector<8x128xi32>
    %c0_i32 = arith.constant 0 : i32
    %6 = vector.broadcast %c0_i32 : i32 to vector<8x128xi32>
    %7 = arith.cmpi slt, %5, %6 : vector<8x128xi32>
    %c16_i32 = arith.constant 16 : i32
    %c0_i32_1 = arith.constant 0 : i32
    %8 = vector.broadcast %c16_i32 : i32 to vector<8x128xi32>
    %9 = vector.broadcast %c0_i32_1 : i32 to vector<8x128xi32>
    %10 = arith.select %7, %8, %9 : vector<8x128xi1>, vector<8x128xi32>
    %11 = math.absi %5 : vector<8x128xi32>
    %c8_i32_2 = arith.constant 8 : i32
    %12 = vector.broadcast %c8_i32_2 : i32 to vector<8x128xi32>
    %13 = arith.cmpi slt, %11, %12 : vector<8x128xi32>
    %c1_i32_3 = arith.constant 1 : i32
    %14 = vector.broadcast %c1_i32_3 : i32 to vector<8x128xi32>
    %15 = arith.maxsi %11, %14 : vector<8x128xi32>
    %16 = arith.sitofp %15 : vector<8x128xi32> to vector<8x128xf32>
    %cst = arith.constant 1.250000e-01 : f32
    %17 = vector.broadcast %cst : f32 to vector<8x128xf32>
    %18 = arith.mulf %16, %17 : vector<8x128xf32>
    %19 = math.log %18 : vector<8x128xf32>
    %cst_4 = arith.constant 0.360673755 : f32
    %20 = vector.broadcast %cst_4 : f32 to vector<8x128xf32>
    %21 = arith.mulf %19, %20 : vector<8x128xf32>
    %cst_5 = arith.constant 8.000000e+00 : f32
    %22 = vector.broadcast %cst_5 : f32 to vector<8x128xf32>
    %23 = arith.mulf %21, %22 : vector<8x128xf32>
    %24 = arith.fptosi %23 : vector<8x128xf32> to vector<8x128xi32>
    %c8_i32_6 = arith.constant 8 : i32
    %25 = vector.broadcast %c8_i32_6 : i32 to vector<8x128xi32>
    %26 = arith.addi %25, %24 : vector<8x128xi32>
    %c15_i32 = arith.constant 15 : i32
    %27 = vector.broadcast %c15_i32 : i32 to vector<8x128xi32>
    %28 = arith.minsi %26, %27 : vector<8x128xi32>
    %29 = arith.select %13, %11, %28 : vector<8x128xi1>, vector<8x128xi32>
    %30 = arith.addi %10, %29 : vector<8x128xi32>
    %c0 = arith.constant 0 : index
    %c0_7 = arith.constant 0 : index
    %31 = vector.load %arg1[%c0, %c0_7] : memref<8x32xf32, #tpu.memory_space<vmem>>, vector<8x1xf32>
    %32 = vector.shape_cast %31 : vector<8x1xf32> to vector<8x1xf32>
    %33 = vector.broadcast %32 : vector<8x1xf32> to vector<8x128xf32>
    %c1_i32_8 = arith.constant 1 : i32
    %34 = vector.broadcast %c1_i32_8 : i32 to vector<8x128xi32>
    %35 = arith.cmpi eq, %30, %34 : vector<8x128xi32>
    %c0_9 = arith.constant 0 : index
    %c1 = arith.constant 1 : index
    %36 = vector.load %arg1[%c0_9, %c1] : memref<8x32xf32, #tpu.memory_space<vmem>>, vector<8x1xf32>
    %37 = vector.shape_cast %36 : vector<8x1xf32> to vector<8x1xf32>
    %38 = vector.broadcast %37 : vector<8x1xf32> to vector<8x128xf32>
    %39 = arith.select %35, %38, %33 : vector<8x128xi1>, vector<8x128xf32>
    %c2_i32 = arith.constant 2 : i32
    %40 = vector.broadcast %c2_i32 : i32 to vector<8x128xi32>
    %41 = arith.cmpi eq, %30, %40 : vector<8x128xi32>
    %c0_10 = arith.constant 0 : index
    %c2 = arith.constant 2 : index
    %42 = vector.load %arg1[%c0_10, %c2] : memref<8x32xf32, #tpu.memory_space<vmem>>, vector<8x1xf32>
    %43 = vector.shape_cast %42 : vector<8x1xf32> to vector<8x1xf32>
    %44 = vector.broadcast %43 : vector<8x1xf32> to vector<8x128xf32>
    %45 = arith.select %41, %44, %39 : vector<8x128xi1>, vector<8x128xf32>
    %c3_i32 = arith.constant 3 : i32
    %46 = vector.broadcast %c3_i32 : i32 to vector<8x128xi32>
    %47 = arith.cmpi eq, %30, %46 : vector<8x128xi32>
    %c0_11 = arith.constant 0 : index
    %c3 = arith.constant 3 : index
    %48 = vector.load %arg1[%c0_11, %c3] : memref<8x32xf32, #tpu.memory_space<vmem>>, vector<8x1xf32>
    %49 = vector.shape_cast %48 : vector<8x1xf32> to vector<8x1xf32>
    %50 = vector.broadcast %49 : vector<8x1xf32> to vector<8x128xf32>
    %51 = arith.select %47, %50, %45 : vector<8x128xi1>, vector<8x128xf32>
    %c4_i32 = arith.constant 4 : i32
    %52 = vector.broadcast %c4_i32 : i32 to vector<8x128xi32>
    %53 = arith.cmpi eq, %30, %52 : vector<8x128xi32>
    %c0_12 = arith.constant 0 : index
    %c4 = arith.constant 4 : index
    %54 = vector.load %arg1[%c0_12, %c4] : memref<8x32xf32, #tpu.memory_space<vmem>>, vector<8x1xf32>
    %55 = vector.shape_cast %54 : vector<8x1xf32> to vector<8x1xf32>
    %56 = vector.broadcast %55 : vector<8x1xf32> to vector<8x128xf32>
    %57 = arith.select %53, %56, %51 : vector<8x128xi1>, vector<8x128xf32>
    %c5_i32 = arith.constant 5 : i32
    %58 = vector.broadcast %c5_i32 : i32 to vector<8x128xi32>
    %59 = arith.cmpi eq, %30, %58 : vector<8x128xi32>
    %c0_13 = arith.constant 0 : index
    %c5 = arith.constant 5 : index
    %60 = vector.load %arg1[%c0_13, %c5] : memref<8x32xf32, #tpu.memory_space<vmem>>, vector<8x1xf32>
    %61 = vector.shape_cast %60 : vector<8x1xf32> to vector<8x1xf32>
    %62 = vector.broadcast %61 : vector<8x1xf32> to vector<8x128xf32>
    %63 = arith.select %59, %62, %57 : vector<8x128xi1>, vector<8x128xf32>
    %c6_i32 = arith.constant 6 : i32
    %64 = vector.broadcast %c6_i32 : i32 to vector<8x128xi32>
    %65 = arith.cmpi eq, %30, %64 : vector<8x128xi32>
    %c0_14 = arith.constant 0 : index
    %c6 = arith.constant 6 : index
    %66 = vector.load %arg1[%c0_14, %c6] : memref<8x32xf32, #tpu.memory_space<vmem>>, vector<8x1xf32>
    %67 = vector.shape_cast %66 : vector<8x1xf32> to vector<8x1xf32>
    %68 = vector.broadcast %67 : vector<8x1xf32> to vector<8x128xf32>
    %69 = arith.select %65, %68, %63 : vector<8x128xi1>, vector<8x128xf32>
    %c7_i32 = arith.constant 7 : i32
    %70 = vector.broadcast %c7_i32 : i32 to vector<8x128xi32>
    %71 = arith.cmpi eq, %30, %70 : vector<8x128xi32>
    %c0_15 = arith.constant 0 : index
    %c7 = arith.constant 7 : index
    %72 = vector.load %arg1[%c0_15, %c7] : memref<8x32xf32, #tpu.memory_space<vmem>>, vector<8x1xf32>
    %73 = vector.shape_cast %72 : vector<8x1xf32> to vector<8x1xf32>
    %74 = vector.broadcast %73 : vector<8x1xf32> to vector<8x128xf32>
    %75 = arith.select %71, %74, %69 : vector<8x128xi1>, vector<8x128xf32>
    %c8_i32_16 = arith.constant 8 : i32
    %76 = vector.broadcast %c8_i32_16 : i32 to vector<8x128xi32>
    %77 = arith.cmpi eq, %30, %76 : vector<8x128xi32>
    %c0_17 = arith.constant 0 : index
    %c8 = arith.constant 8 : index
    %78 = vector.load %arg1[%c0_17, %c8] : memref<8x32xf32, #tpu.memory_space<vmem>>, vector<8x1xf32>
    %79 = vector.shape_cast %78 : vector<8x1xf32> to vector<8x1xf32>
    %80 = vector.broadcast %79 : vector<8x1xf32> to vector<8x128xf32>
    %81 = arith.select %77, %80, %75 : vector<8x128xi1>, vector<8x128xf32>
    %c9_i32 = arith.constant 9 : i32
    %82 = vector.broadcast %c9_i32 : i32 to vector<8x128xi32>
    %83 = arith.cmpi eq, %30, %82 : vector<8x128xi32>
    %c0_18 = arith.constant 0 : index
    %c9 = arith.constant 9 : index
    %84 = vector.load %arg1[%c0_18, %c9] : memref<8x32xf32, #tpu.memory_space<vmem>>, vector<8x1xf32>
    %85 = vector.shape_cast %84 : vector<8x1xf32> to vector<8x1xf32>
    %86 = vector.broadcast %85 : vector<8x1xf32> to vector<8x128xf32>
    %87 = arith.select %83, %86, %81 : vector<8x128xi1>, vector<8x128xf32>
    %c10_i32 = arith.constant 10 : i32
    %88 = vector.broadcast %c10_i32 : i32 to vector<8x128xi32>
    %89 = arith.cmpi eq, %30, %88 : vector<8x128xi32>
    %c0_19 = arith.constant 0 : index
    %c10 = arith.constant 10 : index
    %90 = vector.load %arg1[%c0_19, %c10] : memref<8x32xf32, #tpu.memory_space<vmem>>, vector<8x1xf32>
    %91 = vector.shape_cast %90 : vector<8x1xf32> to vector<8x1xf32>
    %92 = vector.broadcast %91 : vector<8x1xf32> to vector<8x128xf32>
    %93 = arith.select %89, %92, %87 : vector<8x128xi1>, vector<8x128xf32>
    %c11_i32 = arith.constant 11 : i32
    %94 = vector.broadcast %c11_i32 : i32 to vector<8x128xi32>
    %95 = arith.cmpi eq, %30, %94 : vector<8x128xi32>
    %c0_20 = arith.constant 0 : index
    %c11 = arith.constant 11 : index
    %96 = vector.load %arg1[%c0_20, %c11] : memref<8x32xf32, #tpu.memory_space<vmem>>, vector<8x1xf32>
    %97 = vector.shape_cast %96 : vector<8x1xf32> to vector<8x1xf32>
    %98 = vector.broadcast %97 : vector<8x1xf32> to vector<8x128xf32>
    %99 = arith.select %95, %98, %93 : vector<8x128xi1>, vector<8x128xf32>
    %c12_i32 = arith.constant 12 : i32
    %100 = vector.broadcast %c12_i32 : i32 to vector<8x128xi32>
    %101 = arith.cmpi eq, %30, %100 : vector<8x128xi32>
    %c0_21 = arith.constant 0 : index
    %c12 = arith.constant 12 : index
    %102 = vector.load %arg1[%c0_21, %c12] : memref<8x32xf32, #tpu.memory_space<vmem>>, vector<8x1xf32>
    %103 = vector.shape_cast %102 : vector<8x1xf32> to vector<8x1xf32>
    %104 = vector.broadcast %103 : vector<8x1xf32> to vector<8x128xf32>
    %105 = arith.select %101, %104, %99 : vector<8x128xi1>, vector<8x128xf32>
    %c13_i32 = arith.constant 13 : i32
    %106 = vector.broadcast %c13_i32 : i32 to vector<8x128xi32>
    %107 = arith.cmpi eq, %30, %106 : vector<8x128xi32>
    %c0_22 = arith.constant 0 : index
    %c13 = arith.constant 13 : index
    %108 = vector.load %arg1[%c0_22, %c13] : memref<8x32xf32, #tpu.memory_space<vmem>>, vector<8x1xf32>
    %109 = vector.shape_cast %108 : vector<8x1xf32> to vector<8x1xf32>
    %110 = vector.broadcast %109 : vector<8x1xf32> to vector<8x128xf32>
    %111 = arith.select %107, %110, %105 : vector<8x128xi1>, vector<8x128xf32>
    %c14_i32 = arith.constant 14 : i32
    %112 = vector.broadcast %c14_i32 : i32 to vector<8x128xi32>
    %113 = arith.cmpi eq, %30, %112 : vector<8x128xi32>
    %c0_23 = arith.constant 0 : index
    %c14 = arith.constant 14 : index
    %114 = vector.load %arg1[%c0_23, %c14] : memref<8x32xf32, #tpu.memory_space<vmem>>, vector<8x1xf32>
    %115 = vector.shape_cast %114 : vector<8x1xf32> to vector<8x1xf32>
    %116 = vector.broadcast %115 : vector<8x1xf32> to vector<8x128xf32>
    %117 = arith.select %113, %116, %111 : vector<8x128xi1>, vector<8x128xf32>
    %c15_i32_24 = arith.constant 15 : i32
    %118 = vector.broadcast %c15_i32_24 : i32 to vector<8x128xi32>
    %119 = arith.cmpi eq, %30, %118 : vector<8x128xi32>
    %c0_25 = arith.constant 0 : index
    %c15 = arith.constant 15 : index
    %120 = vector.load %arg1[%c0_25, %c15] : memref<8x32xf32, #tpu.memory_space<vmem>>, vector<8x1xf32>
    %121 = vector.shape_cast %120 : vector<8x1xf32> to vector<8x1xf32>
    %122 = vector.broadcast %121 : vector<8x1xf32> to vector<8x128xf32>
    %123 = arith.select %119, %122, %117 : vector<8x128xi1>, vector<8x128xf32>
    %c16_i32_26 = arith.constant 16 : i32
    %124 = vector.broadcast %c16_i32_26 : i32 to vector<8x128xi32>
    %125 = arith.cmpi eq, %30, %124 : vector<8x128xi32>
    %c0_27 = arith.constant 0 : index
    %c16 = arith.constant 16 : index
    %126 = vector.load %arg1[%c0_27, %c16] : memref<8x32xf32, #tpu.memory_space<vmem>>, vector<8x1xf32>
    %127 = vector.shape_cast %126 : vector<8x1xf32> to vector<8x1xf32>
    %128 = vector.broadcast %127 : vector<8x1xf32> to vector<8x128xf32>
    %129 = arith.select %125, %128, %123 : vector<8x128xi1>, vector<8x128xf32>
    %c17_i32 = arith.constant 17 : i32
    %130 = vector.broadcast %c17_i32 : i32 to vector<8x128xi32>
    %131 = arith.cmpi eq, %30, %130 : vector<8x128xi32>
    %c0_28 = arith.constant 0 : index
    %c17 = arith.constant 17 : index
    %132 = vector.load %arg1[%c0_28, %c17] : memref<8x32xf32, #tpu.memory_space<vmem>>, vector<8x1xf32>
    %133 = vector.shape_cast %132 : vector<8x1xf32> to vector<8x1xf32>
    %134 = vector.broadcast %133 : vector<8x1xf32> to vector<8x128xf32>
    %135 = arith.select %131, %134, %129 : vector<8x128xi1>, vector<8x128xf32>
    %c18_i32 = arith.constant 18 : i32
    %136 = vector.broadcast %c18_i32 : i32 to vector<8x128xi32>
    %137 = arith.cmpi eq, %30, %136 : vector<8x128xi32>
    %c0_29 = arith.constant 0 : index
    %c18 = arith.constant 18 : index
    %138 = vector.load %arg1[%c0_29, %c18] : memref<8x32xf32, #tpu.memory_space<vmem>>, vector<8x1xf32>
    %139 = vector.shape_cast %138 : vector<8x1xf32> to vector<8x1xf32>
    %140 = vector.broadcast %139 : vector<8x1xf32> to vector<8x128xf32>
    %141 = arith.select %137, %140, %135 : vector<8x128xi1>, vector<8x128xf32>
    %c19_i32 = arith.constant 19 : i32
    %142 = vector.broadcast %c19_i32 : i32 to vector<8x128xi32>
    %143 = arith.cmpi eq, %30, %142 : vector<8x128xi32>
    %c0_30 = arith.constant 0 : index
    %c19 = arith.constant 19 : index
    %144 = vector.load %arg1[%c0_30, %c19] : memref<8x32xf32, #tpu.memory_space<vmem>>, vector<8x1xf32>
    %145 = vector.shape_cast %144 : vector<8x1xf32> to vector<8x1xf32>
    %146 = vector.broadcast %145 : vector<8x1xf32> to vector<8x128xf32>
    %147 = arith.select %143, %146, %141 : vector<8x128xi1>, vector<8x128xf32>
    %c20_i32 = arith.constant 20 : i32
    %148 = vector.broadcast %c20_i32 : i32 to vector<8x128xi32>
    %149 = arith.cmpi eq, %30, %148 : vector<8x128xi32>
    %c0_31 = arith.constant 0 : index
    %c20 = arith.constant 20 : index
    %150 = vector.load %arg1[%c0_31, %c20] : memref<8x32xf32, #tpu.memory_space<vmem>>, vector<8x1xf32>
    %151 = vector.shape_cast %150 : vector<8x1xf32> to vector<8x1xf32>
    %152 = vector.broadcast %151 : vector<8x1xf32> to vector<8x128xf32>
    %153 = arith.select %149, %152, %147 : vector<8x128xi1>, vector<8x128xf32>
    %c21_i32 = arith.constant 21 : i32
    %154 = vector.broadcast %c21_i32 : i32 to vector<8x128xi32>
    %155 = arith.cmpi eq, %30, %154 : vector<8x128xi32>
    %c0_32 = arith.constant 0 : index
    %c21 = arith.constant 21 : index
    %156 = vector.load %arg1[%c0_32, %c21] : memref<8x32xf32, #tpu.memory_space<vmem>>, vector<8x1xf32>
    %157 = vector.shape_cast %156 : vector<8x1xf32> to vector<8x1xf32>
    %158 = vector.broadcast %157 : vector<8x1xf32> to vector<8x128xf32>
    %159 = arith.select %155, %158, %153 : vector<8x128xi1>, vector<8x128xf32>
    %c22_i32 = arith.constant 22 : i32
    %160 = vector.broadcast %c22_i32 : i32 to vector<8x128xi32>
    %161 = arith.cmpi eq, %30, %160 : vector<8x128xi32>
    %c0_33 = arith.constant 0 : index
    %c22 = arith.constant 22 : index
    %162 = vector.load %arg1[%c0_33, %c22] : memref<8x32xf32, #tpu.memory_space<vmem>>, vector<8x1xf32>
    %163 = vector.shape_cast %162 : vector<8x1xf32> to vector<8x1xf32>
    %164 = vector.broadcast %163 : vector<8x1xf32> to vector<8x128xf32>
    %165 = arith.select %161, %164, %159 : vector<8x128xi1>, vector<8x128xf32>
    %c23_i32 = arith.constant 23 : i32
    %166 = vector.broadcast %c23_i32 : i32 to vector<8x128xi32>
    %167 = arith.cmpi eq, %30, %166 : vector<8x128xi32>
    %c0_34 = arith.constant 0 : index
    %c23 = arith.constant 23 : index
    %168 = vector.load %arg1[%c0_34, %c23] : memref<8x32xf32, #tpu.memory_space<vmem>>, vector<8x1xf32>
    %169 = vector.shape_cast %168 : vector<8x1xf32> to vector<8x1xf32>
    %170 = vector.broadcast %169 : vector<8x1xf32> to vector<8x128xf32>
    %171 = arith.select %167, %170, %165 : vector<8x128xi1>, vector<8x128xf32>
    %c24_i32 = arith.constant 24 : i32
    %172 = vector.broadcast %c24_i32 : i32 to vector<8x128xi32>
    %173 = arith.cmpi eq, %30, %172 : vector<8x128xi32>
    %c0_35 = arith.constant 0 : index
    %c24 = arith.constant 24 : index
    %174 = vector.load %arg1[%c0_35, %c24] : memref<8x32xf32, #tpu.memory_space<vmem>>, vector<8x1xf32>
    %175 = vector.shape_cast %174 : vector<8x1xf32> to vector<8x1xf32>
    %176 = vector.broadcast %175 : vector<8x1xf32> to vector<8x128xf32>
    %177 = arith.select %173, %176, %171 : vector<8x128xi1>, vector<8x128xf32>
    %c25_i32 = arith.constant 25 : i32
    %178 = vector.broadcast %c25_i32 : i32 to vector<8x128xi32>
    %179 = arith.cmpi eq, %30, %178 : vector<8x128xi32>
    %c0_36 = arith.constant 0 : index
    %c25 = arith.constant 25 : index
    %180 = vector.load %arg1[%c0_36, %c25] : memref<8x32xf32, #tpu.memory_space<vmem>>, vector<8x1xf32>
    %181 = vector.shape_cast %180 : vector<8x1xf32> to vector<8x1xf32>
    %182 = vector.broadcast %181 : vector<8x1xf32> to vector<8x128xf32>
    %183 = arith.select %179, %182, %177 : vector<8x128xi1>, vector<8x128xf32>
    %c26_i32 = arith.constant 26 : i32
    %184 = vector.broadcast %c26_i32 : i32 to vector<8x128xi32>
    %185 = arith.cmpi eq, %30, %184 : vector<8x128xi32>
    %c0_37 = arith.constant 0 : index
    %c26 = arith.constant 26 : index
    %186 = vector.load %arg1[%c0_37, %c26] : memref<8x32xf32, #tpu.memory_space<vmem>>, vector<8x1xf32>
    %187 = vector.shape_cast %186 : vector<8x1xf32> to vector<8x1xf32>
    %188 = vector.broadcast %187 : vector<8x1xf32> to vector<8x128xf32>
    %189 = arith.select %185, %188, %183 : vector<8x128xi1>, vector<8x128xf32>
    %c27_i32 = arith.constant 27 : i32
    %190 = vector.broadcast %c27_i32 : i32 to vector<8x128xi32>
    %191 = arith.cmpi eq, %30, %190 : vector<8x128xi32>
    %c0_38 = arith.constant 0 : index
    %c27 = arith.constant 27 : index
    %192 = vector.load %arg1[%c0_38, %c27] : memref<8x32xf32, #tpu.memory_space<vmem>>, vector<8x1xf32>
    %193 = vector.shape_cast %192 : vector<8x1xf32> to vector<8x1xf32>
    %194 = vector.broadcast %193 : vector<8x1xf32> to vector<8x128xf32>
    %195 = arith.select %191, %194, %189 : vector<8x128xi1>, vector<8x128xf32>
    %c28_i32 = arith.constant 28 : i32
    %196 = vector.broadcast %c28_i32 : i32 to vector<8x128xi32>
    %197 = arith.cmpi eq, %30, %196 : vector<8x128xi32>
    %c0_39 = arith.constant 0 : index
    %c28 = arith.constant 28 : index
    %198 = vector.load %arg1[%c0_39, %c28] : memref<8x32xf32, #tpu.memory_space<vmem>>, vector<8x1xf32>
    %199 = vector.shape_cast %198 : vector<8x1xf32> to vector<8x1xf32>
    %200 = vector.broadcast %199 : vector<8x1xf32> to vector<8x128xf32>
    %201 = arith.select %197, %200, %195 : vector<8x128xi1>, vector<8x128xf32>
    %c29_i32 = arith.constant 29 : i32
    %202 = vector.broadcast %c29_i32 : i32 to vector<8x128xi32>
    %203 = arith.cmpi eq, %30, %202 : vector<8x128xi32>
    %c0_40 = arith.constant 0 : index
    %c29 = arith.constant 29 : index
    %204 = vector.load %arg1[%c0_40, %c29] : memref<8x32xf32, #tpu.memory_space<vmem>>, vector<8x1xf32>
    %205 = vector.shape_cast %204 : vector<8x1xf32> to vector<8x1xf32>
    %206 = vector.broadcast %205 : vector<8x1xf32> to vector<8x128xf32>
    %207 = arith.select %203, %206, %201 : vector<8x128xi1>, vector<8x128xf32>
    %c30_i32 = arith.constant 30 : i32
    %208 = vector.broadcast %c30_i32 : i32 to vector<8x128xi32>
    %209 = arith.cmpi eq, %30, %208 : vector<8x128xi32>
    %c0_41 = arith.constant 0 : index
    %c30 = arith.constant 30 : index
    %210 = vector.load %arg1[%c0_41, %c30] : memref<8x32xf32, #tpu.memory_space<vmem>>, vector<8x1xf32>
    %211 = vector.shape_cast %210 : vector<8x1xf32> to vector<8x1xf32>
    %212 = vector.broadcast %211 : vector<8x1xf32> to vector<8x128xf32>
    %213 = arith.select %209, %212, %207 : vector<8x128xi1>, vector<8x128xf32>
    %c31_i32 = arith.constant 31 : i32
    %214 = vector.broadcast %c31_i32 : i32 to vector<8x128xi32>
    %215 = arith.cmpi eq, %30, %214 : vector<8x128xi32>
    %c0_42 = arith.constant 0 : index
    %c31 = arith.constant 31 : index
    %216 = vector.load %arg1[%c0_42, %c31] : memref<8x32xf32, #tpu.memory_space<vmem>>, vector<8x1xf32>
    %217 = vector.shape_cast %216 : vector<8x1xf32> to vector<8x1xf32>
    %218 = vector.broadcast %217 : vector<8x1xf32> to vector<8x128xf32>
    %219 = arith.select %215, %218, %213 : vector<8x128xi1>, vector<8x128xf32>
    %c0_43 = arith.constant 0 : index
    %c0_44 = arith.constant 0 : index
    %220 = vector.load %arg3[%c0_43, %c0_44] : memref<8x128xf32, #tpu.memory_space<vmem>>, vector<8x128xf32>
    tpu.vector_store %arg3[%c0_43, %c0_44], %219 {strides = array<i32>} : memref<8x128xf32, #tpu.memory_space<vmem>>, vector<8x128xf32>,
    %c0_45 = arith.constant 0 : index
    %c7_46 = arith.constant 7 : index
    %221 = vector.load %arg3[%c0_45, %c7_46] : memref<8x128xf32, #tpu.memory_space<vmem>>, vector<8x16xf32>
    %c0_47 = arith.constant 0 : index
    %c0_48 = arith.constant 0 : index
    %c0_49 = arith.constant 0 : index
    %222 = vector.load %arg2[%c0_47, %c0_48, %c0_49] : memref<8x8x16xf32, #tpu.memory_space<vmem>>, vector<8x1x16xf32>
    %223 = vector.shape_cast %222 : vector<8x1x16xf32> to vector<8x16xf32>
    %224 = vector.shape_cast %221 : vector<8x16xf32> to vector<8x1x16xf32>
    tpu.vector_store %arg2[%c0_47, %c0_48, %c0_49], %224 {strides = array<i32>} : memref<8x8x16xf32, #tpu.memory_space<vmem>>, vector<8x1x16xf32>,
    %c0_50 = arith.constant 0 : index
    %c6_51 = arith.constant 6 : index
    %225 = vector.load %arg3[%c0_50, %c6_51] : memref<8x128xf32, #tpu.memory_space<vmem>>, vector<8x16xf32>
    %c0_52 = arith.constant 0 : index
    %c1_53 = arith.constant 1 : index
    %c0_54 = arith.constant 0 : index
    %226 = vector.load %arg2[%c0_52, %c1_53, %c0_54] : memref<8x8x16xf32, #tpu.memory_space<vmem>>, vector<8x1x16xf32>
    %227 = vector.shape_cast %226 : vector<8x1x16xf32> to vector<8x16xf32>
    %228 = vector.shape_cast %225 : vector<8x16xf32> to vector<8x1x16xf32>
    tpu.vector_store %arg2[%c0_52, %c1_53, %c0_54], %228 {strides = array<i32>} : memref<8x8x16xf32, #tpu.memory_space<vmem>>, vector<8x1x16xf32>,
    %c0_55 = arith.constant 0 : index
    %c5_56 = arith.constant 5 : index
    %229 = vector.load %arg3[%c0_55, %c5_56] : memref<8x128xf32, #tpu.memory_space<vmem>>, vector<8x16xf32>
    %c0_57 = arith.constant 0 : index
    %c2_58 = arith.constant 2 : index
    %c0_59 = arith.constant 0 : index
    %230 = vector.load %arg2[%c0_57, %c2_58, %c0_59] : memref<8x8x16xf32, #tpu.memory_space<vmem>>, vector<8x1x16xf32>
    %231 = vector.shape_cast %230 : vector<8x1x16xf32> to vector<8x16xf32>
    %232 = vector.shape_cast %229 : vector<8x16xf32> to vector<8x1x16xf32>
    tpu.vector_store %arg2[%c0_57, %c2_58, %c0_59], %232 {strides = array<i32>} : memref<8x8x16xf32, #tpu.memory_space<vmem>>, vector<8x1x16xf32>,
    %c0_60 = arith.constant 0 : index
    %c4_61 = arith.constant 4 : index
    %233 = vector.load %arg3[%c0_60, %c4_61] : memref<8x128xf32, #tpu.memory_space<vmem>>, vector<8x16xf32>
    %c0_62 = arith.constant 0 : index
    %c3_63 = arith.constant 3 : index
    %c0_64 = arith.constant 0 : index
    %234 = vector.load %arg2[%c0_62, %c3_63, %c0_64] : memref<8x8x16xf32, #tpu.memory_space<vmem>>, vector<8x1x16xf32>
    %235 = vector.shape_cast %234 : vector<8x1x16xf32> to vector<8x16xf32>
    %236 = vector.shape_cast %233 : vector<8x16xf32> to vector<8x1x16xf32>
    tpu.vector_store %arg2[%c0_62, %c3_63, %c0_64], %236 {strides = array<i32>} : memref<8x8x16xf32, #tpu.memory_space<vmem>>, vector<8x1x16xf32>,
    %c0_65 = arith.constant 0 : index
    %c3_66 = arith.constant 3 : index
    %237 = vector.load %arg3[%c0_65, %c3_66] : memref<8x128xf32, #tpu.memory_space<vmem>>, vector<8x16xf32>
    %c0_67 = arith.constant 0 : index
    %c4_68 = arith.constant 4 : index
    %c0_69 = arith.constant 0 : index
    %238 = vector.load %arg2[%c0_67, %c4_68, %c0_69] : memref<8x8x16xf32, #tpu.memory_space<vmem>>, vector<8x1x16xf32>
    %239 = vector.shape_cast %238 : vector<8x1x16xf32> to vector<8x16xf32>
    %240 = vector.shape_cast %237 : vector<8x16xf32> to vector<8x1x16xf32>
    tpu.vector_store %arg2[%c0_67, %c4_68, %c0_69], %240 {strides = array<i32>} : memref<8x8x16xf32, #tpu.memory_space<vmem>>, vector<8x1x16xf32>,
    %c0_70 = arith.constant 0 : index
    %c2_71 = arith.constant 2 : index
    %241 = vector.load %arg3[%c0_70, %c2_71] : memref<8x128xf32, #tpu.memory_space<vmem>>, vector<8x16xf32>
    %c0_72 = arith.constant 0 : index
    %c5_73 = arith.constant 5 : index
    %c0_74 = arith.constant 0 : index
    %242 = vector.load %arg2[%c0_72, %c5_73, %c0_74] : memref<8x8x16xf32, #tpu.memory_space<vmem>>, vector<8x1x16xf32>
    %243 = vector.shape_cast %242 : vector<8x1x16xf32> to vector<8x16xf32>
    %244 = vector.shape_cast %241 : vector<8x16xf32> to vector<8x1x16xf32>
    tpu.vector_store %arg2[%c0_72, %c5_73, %c0_74], %244 {strides = array<i32>} : memref<8x8x16xf32, #tpu.memory_space<vmem>>, vector<8x1x16xf32>,
    %c0_75 = arith.constant 0 : index
    %c1_76 = arith.constant 1 : index
    %245 = vector.load %arg3[%c0_75, %c1_76] : memref<8x128xf32, #tpu.memory_space<vmem>>, vector<8x16xf32>
    %c0_77 = arith.constant 0 : index
    %c6_78 = arith.constant 6 : index
    %c0_79 = arith.constant 0 : index
    %246 = vector.load %arg2[%c0_77, %c6_78, %c0_79] : memref<8x8x16xf32, #tpu.memory_space<vmem>>, vector<8x1x16xf32>
    %247 = vector.shape_cast %246 : vector<8x1x16xf32> to vector<8x16xf32>
    %248 = vector.shape_cast %245 : vector<8x16xf32> to vector<8x1x16xf32>
    tpu.vector_store %arg2[%c0_77, %c6_78, %c0_79], %248 {strides = array<i32>} : memref<8x8x16xf32, #tpu.memory_space<vmem>>, vector<8x1x16xf32>,
    %c0_80 = arith.constant 0 : index
    %c0_81 = arith.constant 0 : index
    %249 = vector.load %arg3[%c0_80, %c0_81] : memref<8x128xf32, #tpu.memory_space<vmem>>, vector<8x16xf32>
    %c0_82 = arith.constant 0 : index
    %c7_83 = arith.constant 7 : index
    %c0_84 = arith.constant 0 : index
    %250 = vector.load %arg2[%c0_82, %c7_83, %c0_84] : memref<8x8x16xf32, #tpu.memory_space<vmem>>, vector<8x1x16xf32>
    %251 = vector.shape_cast %250 : vector<8x1x16xf32> to vector<8x16xf32>
    %252 = vector.shape_cast %249 : vector<8x16xf32> to vector<8x1x16xf32>
    tpu.vector_store %arg2[%c0_82, %c7_83, %c0_84], %252 {strides = array<i32>} : memref<8x8x16xf32, #tpu.memory_space<vmem>>, vector<8x1x16xf32>,
    return
  }
  func.func @transform_0(%arg0: i32) -> (i32, i32) {
    %c0_i32 = arith.constant 0 : i32
    %c0_i32_0 = arith.constant 0 : i32
    %c0_i32_1 = arith.constant 0 : i32
    return %c0_i32, %c0_i32_0 : i32, i32
  }
  func.func @transform_1(%arg0: i32) -> (i32, i32, i32) {
    %c0_i32 = arith.constant 0 : i32
    %c0_i32_0 = arith.constant 0 : i32
    %c0_i32_1 = arith.constant 0 : i32
    return %c0_i32, %arg0, %c0_i32_0 : i32, i32, i32
  }
}

</mosaic_0001>

<bundles_post_ra>
// kernel: tpu_custom_call.1
= control target key start
LH: loop header
LB: loop body
LE: loop exit
PB: predicated region body
PF: predicated region fallthrough
CT: control target
= control target key end

     0   :  { %6 = vsyncpa [#allocation4], 0  ;;  %s2018_s0 = inlined_call_operand.hbm [shape: f32[8,32], index: 0, kind: input, shape index: {}]   ;;  %s2019_s1 = inlined_call_operand.hbm [shape: f32[8,16,16], index: 1, kind: output, shape index: {}]  }
   0x1   :  { %7 = vsyncpa [#allocation5], 0 }
   0x2   :  { %9 = vsyncpa [#allocation5 + $0x1], 0  ;;  %s1567_s6 = smov 0   ;;  %s1569_s7 = smov 0  }
   0x3   :  { %s1571_s8 = smov 0   ;;  %s1573_s9 = smov 0  }
   0x4 LB: > { %s1588_s10 = sadd.s32 4294967295, %s1510_s9   ;;  %s1274_s11 = sadd.s32 4294967294, %s1510_s9   ;;  %s1510_s9 = sphi %s1573_s9, %s2035_s9   ;;  %s1506_s8 = sphi %s1571_s8, %s2034_s8   ;;  %s1502_s7 = sphi %s1569_s7, %s2033_s7   ;;  %s1498_s6 = sphi %s1567_s6, %s2032_s6  }
   0x5   : > { %s1592_s12 = sadd.s32 1, %s1510_s9   ;;  %s43_s13 = sadd.s32 1, %s1506_s8 }
   0x6   : > { %s40_s14 = ssub.s32 %s1510_s9, %s1592_s12  ;;  %p53_p0 = scmp.ne.s32.totalorder %s1506_s8, %s1502_s7 }
   0x7   : > { %p41_p1 = scmp.eq.s32.totalorder %s40_s14, 0  ;;  %p54_p2 = scmp.eq.s32.totalorder %s1588_s10, 1 }
   0x8   : > { %p59_p3 = scmp.ne.s32.totalorder %s1502_s7, %s1498_s6  ;;  %p60_p4 = scmp.eq.s32.totalorder %s1274_s11, 1 }
   0x9   : > { %s1603_s15 = scalar_select %p41_p1, %s1506_s8, %s43_s13  }
   0xa   : > { %p1605_p5 = por %p54_p2, %p53_p0  ;;  %p1609_p6 = por %p60_p4, %p59_p3 }
   0xb   : > { %p1275_p7 = scmp.ge.s32.totalorder %s1510_s9, 1  ;;  %p67_p8 = scmp.lt.s32.totalorder %s1510_s9, 3 }
   0xc   : > { %s2023_s16 = scalar_select %p1605_p5, 1, 0 }
   0xd   : > { %s2024_s17 = scalar_select %p1609_p6, 1, 0 }
   0xe   : > { %p2020_p9 = scmp.eq.s32.totalorder %s1588_s10, 0  ;;  %p1616_p10 = pnand %p1275_p7, %p67_p8 }
   0xf   : > { %s1512_s19 = smov [#allocation3]   ;;  %s1416_s24 = scalar_lea.hbm %s2018_s0, 128 }
  0x10   : > { %s2025_s18 = scalar_select %p1616_p10, 1, 0 }
  0x11   : > { %s80_s20 = sshll.u32 %s1512_s19, 4  ;;  %p1294_p11 = pneg %p1616_p10  ;;  %s81_s20 = int_to_ptr.vmem [resolvable:$true] %s80_s20 }
  0x12   : > { %p1417_p13 = scmp.ne.s32.totalorder %s2018_s0, %s1416_s24  ;;  %p1423_p3 = scmp.lt.u32.totalorder %s1416_s24, %s2018_s0 }
  0x13   : > { %p1624_p12 = pnand %p2020_p9, %p1294_p11 }
  0x15   : > { %p1418_p0 = pneg %p1624_p12 }
  0x17   : > { %p1419_p1 = pnand %p1418_p0, %p1417_p13 }
  0x19   : > { %p1420_p2 = pneg %p1419_p1 }
  0x1b   : > { %p1425_p4 = pnand %p1423_p3, %p1420_p2 }
  0x1d   : > { %1428 = shalt.err (!%p1425_p4)
}
  0x1e   : > { %s1429_s29 = scalar_lea.vmem %s81_s20, 128  ;;  %p1437_p9 = scmp.lt.s32.totalorder %s81_s20, %s81_s20 }
  0x1f   : > { %p1430_p7 = scmp.ne.s32.totalorder %s81_s20, %s1429_s29  ;;  %p1438_p6 = scmp.lt.s32.totalorder %s1429_s29, %s1429_s29 }
  0x21   : > { %p1432_p8 = pnand %p1430_p7, %p1418_p0  ;;  %p1439_p5 = por %p1438_p6, %p1437_p9 }
  0x23   : > { %p1433_p11 = pneg %p1432_p8 }
  0x25   : > { %p1440_p10 = pnand %p1439_p5, %p1433_p11 }
  0x27   : > { %1443 = shalt.err (!%p1440_p10)
}
  0x28   : > { %1297 = dma.hbm_to_vmem [thread:$0]  (!%p1624_p12), %s2018_s0, 128, %s81_s20, [#allocation4]  }
  0x29   : > { %p2027_p13 = scmp.ne.s32.totalorder %s2025_s18, 0 }
  0x2a   : > { %p2028_p1 = scmp.eq.s32.totalorder (!%p2027_p13), %s1588_s10, 0 }
  0x2b   : > { %93 = sbr.rel (%p2027_p13) target bundleno = 530 (0x212), region = 24 }
  0x32   : > { %1489 = dma.done.wait (%p2028_p1), [#allocation4], 128   ;;  %p2029_p0 = pmov %p2028_p1 }
  0x33   : > { %v1513_v0 = vmov 2   ;;  %v1514_v1 = vmov 0   ;;  %v1651_v2 = vld [vmem:[#allocation3] sm:$0xff]  ;;  %v1515_v3 = vmov 3   ;;  %v1516_v4 = vmov 1   ;;  %s1280_s3 = sshll.u32 %s1588_s10, 3 }
  0x34   : > { %1491 = vsyncadd (%p2029_p0), [#allocation4], 4294967168  ;;  %1383 = vset.pattern.permute.xlu1 %v1513_v0  ;;  %1381 = vset.pattern.permute.xlu0 %v1514_v1  ;;  %v1517_v5 = vmov 4   ;;  %v1518_v6 = vmov 5   ;;  %v1519_v7 = vmov 6   ;;  %v1520_v8 = vmov 8  }
  0x35   : > { %147 = vperm.xlu1 %1383, %v1651_v2   ;;  %136 = vperm.xlu0 %1381, %v1651_v2   ;;  %v1521_v9 = vmov 7   ;;  %v1522_v10 = vmov 11   ;;  %v1523_v11 = vmov 9   ;;  %v1524_v12 = vmov 14   ;;  %s111_s4 = sadd.s32 7, %s1280_s3  ;;  %s105_s5 = sand.u32 1, %s1502_s7  }
  0x36   : > { %v1525_v13 = vmov 10   ;;  %v1526_v14 = vmov 17   ;;  %v1527_v15 = vmov 12   ;;  %v1528_v16 = vmov 20   ;;  %s1279_s11 = sshll.u32 %s105_s5, 6  ;;  %s1546_s14 = smov 121  }
  0x37   : > { %v1529_v17 = vmov 13   ;;  %v1530_v18 = vmov 23   ;;  %v1531_v19 = vmov 15   ;;  %v1532_v20 = vmov 26   ;;  %s1725_s13 = scalar_lea.vmem [#allocation6], %s1279_s11  ;;  %s1547_s18 = smov 122  }
  0x38   : > { %v1533_v21 = vmov 16   ;;  %v1534_v22 = vmov 29   ;;  %v1535_v23 = vmov 18   ;;  %v1536_v24 = vmov 31   ;;  %s1548_s19 = smov 123   ;;  %s1549_s20 = smov 124  }
  0x39   : > { %1384 = vset.pattern.permute.xlu1 %v1515_v3  ;;  %1382 = vset.pattern.permute.xlu0 %v1516_v4  ;;  %v1537_v25 = vmov 19   ;;  %v1538_v26 = vmov 21   ;;  %v1539_v27 = vmov 22   ;;  %v1540_v28 = vmov 24   ;;  %s1550_s21 = smov 125   ;;  %s1551_s22 = smov 126  }
  0x3a   : > { %153 = vperm.xlu1 %1384, %v1651_v2   ;;  %141 = vperm.xlu0 %1382, %v1651_v2   ;;  %v1541_v29 = vmov 25   ;;  %v1542_v30 = vmov 27   ;;  %v109_v31 = vlaneseq  ;;  %v1543_v32 = vmov 28   ;;  %s1552_s23 = smov 127   ;;  %s1283_s24 = sshll.u32 %s1588_s10, 7 }
  0x3b   : > { %v112_v34 = vstv %s111_s4  ;;  %v1544_v35 = vmov 30   ;;  %s1212_s25 = sshll.u32 %s1725_s13, 4  ;;  %s1967_s28 = scalar_lea.hbm %s2019_s1, %s1283_s24  ;;  %s1969_s25 = int_to_ptr.vmem [resolvable:$true] %s1212_s25 }
  0x3c   : > { %v110_v33 = vand.u32 127, %v109_v31  ;;  %s1977_s10 = scalar_lea.sflag [#allocation5], %s105_s5  ;;  %s1444_s29 = scalar_lea.vmem %s1969_s25, 1024 }
  0x3d   : > { %p1445_p5 = scmp.ne.s32.totalorder %s1969_s25, %s1444_s29  ;;  %p2030_p6 = scmp.ne.s32.totalorder %s2023_s16, 0 }
  0x3e   : > { %1385 = vset.pattern.permute.xlu1 %v1517_v5  ;;  %1386 = vset.pattern.permute.xlu0 %v1518_v6  ;;  %v113_v36 = vsub.s32 %v112_v34, %v110_v33  ;;  %s1553_s30 = smov [#allocation6]  }
  0x3f   : > { %159 = vperm.xlu1 %1385, %v1651_v2   ;;  %165 = vperm.xlu0 %1386, %v1651_v2   ;;  %p1446_p9 = pnand %p1445_p5, %p2030_p6  ;;  %s1448_s2 = sshll.u32 %s1553_s30, 4  ;;  %s1449_s2 = int_to_ptr.vmem [resolvable:$false] %s1448_s2 }
  0x40   : > { %v116_v37 = vsub.s32 0, %v113_v36  ;;  %vm114_vm2 = vcmp.lt.s32.totalorder %v113_v36, 0  ;;  %s1450_s3 = scalar_lea.vmem %s1449_s2, 2048  ;;  %p1451_p12 = scmp.lt.s32.totalorder %s1969_s25, %s1449_s2 }
  0x41   : > { %v115_v58 = vsel %vm114_vm2, 16, %v1514_v1  ;;  %p1447_p10 = pneg %p1446_p9  ;;  %p1452_p2 = scmp.lt.s32.totalorder %s1450_s3, %s1444_s29 }
  0x42   : > { %v1281_v38 = vmin.u32 %v116_v37, %v113_v36 }
  0x43   : > { %1387 = vset.pattern.permute.xlu1 %v1519_v7  ;;  %1389 = vset.pattern.permute.xlu0 %v1520_v8  ;;  %p1453_p3 = por %p1452_p2, %p1451_p12 }
  0x44   : > { %171 = vperm.xlu1 %1387, %v1651_v2   ;;  %183 = vperm.xlu0 %1389, %v1651_v2   ;;  %vm119_vm0 = vcmp.gt.s32.totalorder %v1281_v38, 1  ;;  %vm118_vm3 = vcmp.lt.s32.totalorder %v1281_v38, 8 }
  0x45   : > { %v120_v39 = vsel %vm119_vm0, %v1281_v38, 1  ;;  %p1454_p4 = pnand %p1453_p3, %p1447_p10 }
  0x46   : > { %v121_v40 = vcvt.s32.f32 %v120_v39 }
  0x48   : > { %1388 = vset.pattern.permute.xlu1 %v1521_v9  ;;  %1392 = vset.pattern.permute.xlu0 %v1522_v10  ;;  %v122_v41 = vmul.f32 0.125, %v121_v40  ;;  %v1545_v40 = vmov 1966171168  }
  0x49   : > { %177 = vperm.xlu1 %1388, %v1651_v2   ;;  %201 = vperm.xlu0 %1392, %v1651_v2  }
  0x4a   : > { %1414 = vlog2.f32 %v122_v41  ;;  %v330_v41 = vunpack.c.l.s4 %v1545_v40 }
  0x4d   : > { %1390 = vset.pattern.permute.xlu1 %v1523_v11  ;;  %1395 = vset.pattern.permute.xlu0 %v1524_v12 }
  0x4e   : > { %189 = vperm.xlu1 %1390, %v1651_v2   ;;  %219 = vperm.xlu0 %1395, %v1651_v2  }
  0x52   : > { %1391 = vset.pattern.permute.xlu1 %v1525_v13  ;;  %1398 = vset.pattern.permute.xlu0 %v1526_v14 }
  0x53   : > { %195 = vperm.xlu1 %1391, %v1651_v2   ;;  %237 = vperm.xlu0 %1398, %v1651_v2  }
  0x54   : > { %v1415_v44 = vpop.eup %1414 }
  0x55   : > { %v124_v45 = vmul.f32 0.6931472, %v1415_v44 }
  0x57   : > { %1393 = vset.pattern.permute.xlu1 %v1527_v15  ;;  %1401 = vset.pattern.permute.xlu0 %v1528_v16  ;;  %v125_v47 = vmul.f32 0.36067376, %v124_v45 }
  0x58   : > { %207 = vperm.xlu1 %1393, %v1651_v2   ;;  %255 = vperm.xlu0 %1401, %v1651_v2  }
  0x59   : > { %v126_v49 = vmul.f32 8.0, %v125_v47  ;;  %v333_v47 = vshrl.u32 %v109_v31, 7 }
  0x5b   : > { %v1286_v51 = vtrunc.f32 %v126_v49 }
  0x5c   : > { %1394 = vset.pattern.permute.xlu1 %v1529_v17  ;;  %1404 = vset.pattern.permute.xlu0 %v1530_v18 }
  0x5d   : > { %213 = vperm.xlu1 %1394, %v1651_v2   ;;  %273 = vperm.xlu0 %1404, %v1651_v2   ;;  %v1287_v52 = vcvt.f32.s32 %v1286_v51 }
  0x5f   : > { %v128_v54 = vadd.s32 8, %v1287_v52 }
  0x61   : > { %1396 = vset.pattern.permute.xlu1 %v1531_v19  ;;  %1407 = vset.pattern.permute.xlu0 %v1532_v20  ;;  %vm129_vm1 = vcmp.lt.s32.totalorder %v128_v54, 15 }
  0x62   : > { %225 = vperm.xlu1 %1396, %v1651_v2   ;;  %291 = vperm.xlu0 %1407, %v1651_v2   ;;  %v130_v57 = vsel %vm129_vm1, %v128_v54, 15 }
  0x63   : > { %v131_v59 = vsel %vm118_vm3, %v1281_v38, %v130_v57 }
  0x64   : > { %v1688_v62 = vadd.s32 %v131_v59, %v115_v58  ;;  %v379_v59 = vsub.s32 0, %v333_v47 }
  0x66   : > { %1397 = vset.pattern.permute.xlu1 %v1533_v21  ;;  %1410 = vset.pattern.permute.xlu0 %v1534_v22  ;;  %vm139_vm4 = vcmp.eq.s32.totalorder %v1688_v62, 1  ;;  %vm145_vm5 = vcmp.eq.s32.totalorder %v1688_v62, 2  ;;  %vm151_vm6 = vcmp.eq.s32.totalorder %v1688_v62, 3  ;;  %vm157_vm7 = vcmp.eq.s32.totalorder %v1688_v62, 4 }
  0x67   : > { %231 = vperm.xlu1 %1397, %v1651_v2   ;;  %309 = vperm.xlu0 %1410, %v1651_v2   ;;  %vm163_vm8 = vcmp.eq.s32.totalorder %v1688_v62, 5  ;;  %vm169_vm9 = vcmp.eq.s32.totalorder %v1688_v62, 6  ;;  %vm175_vm10 = vcmp.eq.s32.totalorder %v1688_v62, 7  ;;  %vm181_vm11 = vcmp.eq.s32.totalorder %v1688_v62, 8 }
  0x68   : > { %vm187_vm12 = vcmp.eq.s32.totalorder %v1688_v62, 9  ;;  %vm193_vm13 = vcmp.eq.s32.totalorder %v1688_v62, 10  ;;  %vm199_vm14 = vcmp.eq.s32.totalorder %v1688_v62, 11  ;;  %vm205_vm15 = vcmp.eq.s32.totalorder %v1688_v62, 12 }
  0x69   : > { %vm211_vm0 = vcmp.eq.s32.totalorder %v1688_v62, 13  ;;  %vm217_vm1 = vcmp.eq.s32.totalorder %v1688_v62, 14  ;;  %vm223_vm2 = vcmp.eq.s32.totalorder %v1688_v62, 15  ;;  %vm229_vm3 = vcmp.eq.s32.totalorder %v1688_v62, 16 }
  0x6b   : > { %1399 = vset.pattern.permute.xlu1 %v1535_v23  ;;  %1413 = vset.pattern.permute.xlu0 %v1536_v24 }
  0x6c   : > { %243 = vperm.xlu1 %1399, %v1651_v2  }
  0x70   : > { %1400 = vset.pattern.permute.xlu1 %v1537_v25 }
  0x71   : > { %249 = vperm.xlu1 %1400, %v1651_v2  }
  0x75   : > { %1402 = vset.pattern.permute.xlu1 %v1538_v26 }
  0x76   : > { %261 = vperm.xlu1 %1402, %v1651_v2  }
  0x7a   : > { %1403 = vset.pattern.permute.xlu1 %v1539_v27 }
  0x7b   : > { %267 = vperm.xlu1 %1403, %v1651_v2  }
  0x7f   : > { %1405 = vset.pattern.permute.xlu1 %v1540_v28 }
  0x80   : > { %279 = vperm.xlu1 %1405, %v1651_v2  }
  0x84   : > { %1406 = vset.pattern.permute.xlu1 %v1541_v29 }
  0x85   : > { %285 = vperm.xlu1 %1406, %v1651_v2  }
  0x89   : > { %1408 = vset.pattern.permute.xlu1 %v1542_v30 }
  0x8a   : > { %297 = vperm.xlu1 %1408, %v1651_v2  }
  0x8e   : > { %1409 = vset.pattern.permute.xlu1 %v1543_v32 }
  0x8f   : > { %303 = vperm.xlu1 %1409, %v1651_v2  }
  0x93   : > { %1411 = vset.pattern.permute.xlu1 %v1544_v35 }
  0x94   : > { %315 = vperm.xlu1 %1411, %v1651_v2  }
  0x98   : > { %1412 = vset.pattern.permute.xlu1 %v1536_v24 }
  0x99   : > { %321 = vperm.xlu1 %1412, %v1651_v2  }
  0xb4   : > { %v148_v42 = vpop.permute.xlu1 %147  ;;  %v137_v60 = vpop.permute.xlu0 %136 }
  0xb9   : > { %v154_v43 = vpop.permute.xlu1 %153  ;;  %v142_v0 = vpop.permute.xlu0 %141 }
  0xba   : > { %v144_v2 = vsel %vm139_vm4, %v142_v0, %v137_v60  ;;  %vm235_vm4 = vcmp.eq.s32.totalorder %v1688_v62, 17 }
  0xbb   : > { %v150_v4 = vsel %vm145_vm5, %v148_v42, %v144_v2  ;;  %vm241_vm5 = vcmp.eq.s32.totalorder %v1688_v62, 18 }
  0xbc   : > { %v156_v5 = vsel %vm151_vm6, %v154_v43, %v150_v4  ;;  %vm247_vm6 = vcmp.eq.s32.totalorder %v1688_v62, 19 }
  0xbe   : > { %v160_v46 = vpop.permute.xlu1 %159  ;;  %v166_v7 = vpop.permute.xlu0 %165 }
  0xbf   : > { %v162_v6 = vsel %vm157_vm7, %v160_v46, %v156_v5  ;;  %vm253_vm7 = vcmp.eq.s32.totalorder %v1688_v62, 20  ;;  %v331_v46 = vunpack.c.0.s8 %v330_v41 }
  0xc0   : > { %v168_v8 = vsel %vm163_vm8, %v166_v7, %v162_v6  ;;  %vm259_vm8 = vcmp.eq.s32.totalorder %v1688_v62, 21 }
  0xc3   : > { %v172_v48 = vpop.permute.xlu1 %171  ;;  %v184_v12 = vpop.permute.xlu0 %183 }
  0xc4   : > { %v174_v9 = vsel %vm169_vm9, %v172_v48, %v168_v8  ;;  %vm265_vm9 = vcmp.eq.s32.totalorder %v1688_v62, 22 }
  0xc8   : > { %v178_v50 = vpop.permute.xlu1 %177  ;;  %v202_v17 = vpop.permute.xlu0 %201 }
  0xc9   : > { %v180_v11 = vsel %vm175_vm10, %v178_v50, %v174_v9  ;;  %vm271_vm10 = vcmp.eq.s32.totalorder %v1688_v62, 23 }
  0xca   : > { %v186_v13 = vsel %vm181_vm11, %v184_v12, %v180_v11  ;;  %vm277_vm11 = vcmp.eq.s32.totalorder %v1688_v62, 24 }
  0xcd   : > { %v190_v53 = vpop.permute.xlu1 %189  ;;  %v220_v22 = vpop.permute.xlu0 %219 }
  0xce   : > { %v192_v14 = vsel %vm187_vm12, %v190_v53, %v186_v13  ;;  %vm283_vm12 = vcmp.eq.s32.totalorder %v1688_v62, 25  ;;  %v334_v53 = vsub.s32 %v331_v46, %v333_v47 }
  0xd2   : > { %v196_v55 = vpop.permute.xlu1 %195  ;;  %v238_v27 = vpop.permute.xlu0 %237 }
  0xd3   : > { %v198_v16 = vsel %vm193_vm13, %v196_v55, %v192_v14  ;;  %vm289_vm13 = vcmp.eq.s32.totalorder %v1688_v62, 26 }
  0xd4   : > { %v204_v18 = vsel %vm199_vm14, %v202_v17, %v198_v16  ;;  %vm295_vm14 = vcmp.eq.s32.totalorder %v1688_v62, 27 }
  0xd7   : > { %v208_v56 = vpop.permute.xlu1 %207  ;;  %v256_v33 = vpop.permute.xlu0 %255 }
  0xd8   : > { %v210_v19 = vsel %vm205_vm15, %v208_v56, %v204_v18  ;;  %vm301_vm15 = vcmp.eq.s32.totalorder %v1688_v62, 28 }
  0xdc   : > { %v214_v61 = vpop.permute.xlu1 %213  ;;  %v274_v38 = vpop.permute.xlu0 %273 }
  0xdd   : > { %v216_v21 = vsel %vm211_vm0, %v214_v61, %v210_v19  ;;  %vm307_vm0 = vcmp.eq.s32.totalorder %v1688_v62, 29 }
  0xde   : > { %v222_v23 = vsel %vm217_vm1, %v220_v22, %v216_v21  ;;  %vm313_vm1 = vcmp.eq.s32.totalorder %v1688_v62, 30 }
  0xe1   : > { %v226_v63 = vpop.permute.xlu1 %225  ;;  %v292_v45 = vpop.permute.xlu0 %291 }
  0xe2   : > { %v228_v24 = vsel %vm223_vm2, %v226_v63, %v222_v23  ;;  %vm319_vm2 = vcmp.eq.s32.totalorder %v1688_v62, 31 }
  0xe6   : > { %v232_v3 = vpop.permute.xlu1 %231  ;;  %v310_v52 = vpop.permute.xlu0 %309 }
  0xe7   : > { %v234_v26 = vsel %vm229_vm3, %v232_v3, %v228_v24  ;;  %vm433_vm3 = vcmask 122880  }
  0xe8   : > { %v240_v28 = vsel %vm235_vm4, %v238_v27, %v234_v26 }
  0xeb   : > { %v244_v1 = vpop.permute.xlu1 %243 }
  0xec   : > { %v246_v29 = vsel %vm241_vm5, %v244_v1, %v240_v28 }
  0xf0   : > { %v250_v10 = vpop.permute.xlu1 %249 }
  0xf1   : > { %v252_v32 = vsel %vm247_vm6, %v250_v10, %v246_v29 }
  0xf2   : > { %v258_v34 = vsel %vm253_vm7, %v256_v33, %v252_v32 }
  0xf5   : > { %v262_v15 = vpop.permute.xlu1 %261 }
  0xf6   : > { %v264_v35 = vsel %vm259_vm8, %v262_v15, %v258_v34 }
  0xfa   : > { %v268_v20 = vpop.permute.xlu1 %267 }
  0xfb   : > { %v270_v37 = vsel %vm265_vm9, %v268_v20, %v264_v35 }
  0xfc   : > { %v276_v39 = vsel %vm271_vm10, %v274_v38, %v270_v37 }
  0xff   : > { %v280_v25 = vpop.permute.xlu1 %279 }
 0x100   : > { %v282_v42 = vsel %vm277_vm11, %v280_v25, %v276_v39 }
 0x104   : > { %v286_v30 = vpop.permute.xlu1 %285 }
 0x105   : > { %v288_v44 = vsel %vm283_vm12, %v286_v30, %v282_v42 }
 0x106   : > { %v294_v48 = vsel %vm289_vm13, %v292_v45, %v288_v44 }
 0x109   : > { %v298_v36 = vpop.permute.xlu1 %297 }
 0x10a   : > { %v300_v49 = vsel %vm295_vm14, %v298_v36, %v294_v48 }
 0x10e   : > { %v304_v43 = vpop.permute.xlu1 %303 }
 0x10f   : > { %v306_v51 = vsel %vm301_vm15, %v304_v43, %v300_v49 }
 0x110   : > { %v312_v54 = vsel %vm307_vm0, %v310_v52, %v306_v51 }
 0x113   : > { %v316_v50 = vpop.permute.xlu1 %315 }
 0x114   : > { %v318_v55 = vsel %vm313_vm1, %v316_v50, %v312_v54 }
 0x118   : > { %v322_v56 = vpop.permute.xlu1 %321 }
 0x119   : > { %v324_v57 = vsel %vm319_vm2, %v322_v56, %v318_v55 }
 0x11a   : > { %v328_v31 = vcombine.high %v324_v57, %v324_v57  ;;  %v335_v58 = vrot.slane %v324_v57, %v334_v53 }
 0x11c   : > { %v342_v60 = vrot.slane %v328_v31, %v334_v53  ;;  %v343_v61 = vcombine.high %v335_v58, %v335_v58  ;;  %v351_v63 = vrot.slane %v335_v58, %v334_v53 }
 0x11e   : > { %v344_v0 = vcombine.high %v342_v60, %v342_v60  ;;  %v358_v2 = vrot.slane %v342_v60, %v334_v53  ;;  %v365_v3 = vrot.slane %v343_v61, %v334_v53  ;;  %v373_v4 = vcombine.high %v351_v63, %v351_v63  ;;  %1191 = vst.msk [vmem:[%s1725_s13 + $0x7] sm:$0x1] %vm433_vm3, %v351_v63 }
 0x11f   : > { %v1729_v62 = vrot.slane %v351_v63, %v379_v59 }
 0x120   : > { %v372_v5 = vrot.slane %v344_v0, %v334_v53  ;;  %v374_v1 = vcombine.high %v358_v2, %v358_v2  ;;  %v375_v6 = vcombine.high %v365_v3, %v365_v3  ;;  %v1731_v7 = vrot.slane %v365_v3, %v379_v59  ;;  %1192 = vst.msk [vmem:[%s1725_s13 + $0xf] sm:$0x1] %vm433_vm3, %v365_v3 }
 0x121   : > { %1193 = vst.msk [vmem:[%s1725_s13 + $0x17] sm:$0x1] %vm433_vm3, %v373_v4  ;;  %1195 = vst.msk [vmem:[%s1725_s13 + $0x27] sm:$0x1] %vm433_vm3, %v358_v2  ;;  %v1739_v8 = vrot.slane %v373_v4, %v379_v59  ;;  %v1741_v9 = vrot.slane %v358_v2, %v379_v59  ;;  %409 = vrot.lane.b32.xlu0 %v1729_v62, %s1546_s14 }
 0x122   : > { %v376_v10 = vcombine.high %v372_v5, %v372_v5  ;;  %v1745_v11 = vrot.slane %v375_v6, %v379_v59  ;;  %v1747_v12 = vrot.slane %v372_v5, %v379_v59  ;;  %v1749_v13 = vrot.slane %v374_v1, %v379_v59  ;;  %1194 = vst.msk [vmem:[%s1725_s13 + $0x1f] sm:$0x1] %vm433_vm3, %v375_v6 }
 0x123   : > { %1196 = vst.msk [vmem:[%s1725_s13 + $0x2f] sm:$0x1] %vm433_vm3, %v372_v5  ;;  %1197 = vst.msk [vmem:[%s1725_s13 + $0x37] sm:$0x1] %vm433_vm3, %v374_v1  ;;  %411 = vrot.lane.b32.xlu1 %v1731_v7, %s1546_s14 }
 0x124   : > { %v408_v14 = vrot.slane %v376_v10, %v379_v59  ;;  %1198 = vst.msk [vmem:[%s1725_s13 + $0x3f] sm:$0x1] %vm433_vm3, %v376_v10 }
 0x125   : > { %525 = vrot.lane.b32.xlu0 %v1729_v62, %s1547_s18 }
 0x127   : > { %527 = vrot.lane.b32.xlu1 %v1731_v7, %s1547_s18 }
 0x129   : > { %640 = vrot.lane.b32.xlu0 %v1729_v62, %s1548_s19 }
 0x12b   : > { %642 = vrot.lane.b32.xlu1 %v1731_v7, %s1548_s19 }
 0x12d   : > { %755 = vrot.lane.b32.xlu0 %v1729_v62, %s1549_s20 }
 0x12f   : > { %757 = vrot.lane.b32.xlu1 %v1731_v7, %s1549_s20 }
 0x131   : > { %870 = vrot.lane.b32.xlu0 %v1729_v62, %s1550_s21 }
 0x133   : > { %872 = vrot.lane.b32.xlu1 %v1731_v7, %s1550_s21 }
 0x135   : > { %985 = vrot.lane.b32.xlu0 %v1729_v62, %s1551_s22 }
 0x137   : > { %987 = vrot.lane.b32.xlu1 %v1731_v7, %s1551_s22 }
 0x139   : > { %413 = vrot.lane.b32.xlu0 %v1739_v8, %s1546_s14 }
 0x13b   : > { %415 = vrot.lane.b32.xlu1 %v1745_v11, %s1546_s14 }
 0x13d   : > { %417 = vrot.lane.b32.xlu0 %v1741_v9, %s1546_s14 }
 0x13f   : > { %419 = vrot.lane.b32.xlu1 %v1747_v12, %s1546_s14 }
 0x141   : > { %529 = vrot.lane.b32.xlu0 %v1739_v8, %s1547_s18 }
 0x143   : > { %531 = vrot.lane.b32.xlu1 %v1745_v11, %s1547_s18 }
 0x145   : > { %533 = vrot.lane.b32.xlu0 %v1741_v9, %s1547_s18 }
 0x147   : > { %535 = vrot.lane.b32.xlu1 %v1747_v12, %s1547_s18 }
 0x149   : > { %644 = vrot.lane.b32.xlu0 %v1739_v8, %s1548_s19 }
 0x14b   : > { %646 = vrot.lane.b32.xlu1 %v1745_v11, %s1548_s19 }
 0x14d   : > { %648 = vrot.lane.b32.xlu0 %v1741_v9, %s1548_s19 }
 0x14f   : > { %650 = vrot.lane.b32.xlu1 %v1747_v12, %s1548_s19 }
 0x151   : > { %759 = vrot.lane.b32.xlu0 %v1739_v8, %s1549_s20 }
 0x153   : > { %761 = vrot.lane.b32.xlu1 %v1745_v11, %s1549_s20 }
 0x155   : > { %763 = vrot.lane.b32.xlu0 %v1741_v9, %s1549_s20 }
 0x157   : > { %765 = vrot.lane.b32.xlu1 %v1747_v12, %s1549_s20 }
 0x159   : > { %874 = vrot.lane.b32.xlu0 %v1739_v8, %s1550_s21 }
 0x15b   : > { %876 = vrot.lane.b32.xlu1 %v1745_v11, %s1550_s21 }
 0x15d   : > { %878 = vrot.lane.b32.xlu0 %v1741_v9, %s1550_s21 }
 0x15f   : > { %880 = vrot.lane.b32.xlu1 %v1747_v12, %s1550_s21 }
 0x161   : > { %989 = vrot.lane.b32.xlu0 %v1739_v8, %s1551_s22 }
 0x163   : > { %991 = vrot.lane.b32.xlu1 %v1745_v11, %s1551_s22 }
 0x165   : > { %993 = vrot.lane.b32.xlu0 %v1741_v9, %s1551_s22 }
 0x167   : > { %995 = vrot.lane.b32.xlu1 %v1747_v12, %s1551_s22 }
 0x169   : > { %421 = vrot.lane.b32.xlu0 %v1749_v13, %s1546_s14 }
 0x16b   : > { %423 = vrot.lane.b32.xlu1 %v408_v14, %s1546_s14 }
 0x16d   : > { %537 = vrot.lane.b32.xlu0 %v1749_v13, %s1547_s18 }
 0x16f   : > { %539 = vrot.lane.b32.xlu1 %v408_v14, %s1547_s18 }
 0x171   : > { %652 = vrot.lane.b32.xlu0 %v1749_v13, %s1548_s19 }
 0x173   : > { %654 = vrot.lane.b32.xlu1 %v408_v14, %s1548_s19 }
 0x175   : > { %767 = vrot.lane.b32.xlu0 %v1749_v13, %s1549_s20 }
 0x177   : > { %769 = vrot.lane.b32.xlu1 %v408_v14, %s1549_s20 }
 0x179   : > { %882 = vrot.lane.b32.xlu0 %v1749_v13, %s1550_s21 }
 0x17b   : > { %884 = vrot.lane.b32.xlu1 %v408_v14, %s1550_s21 }
 0x17d   : > { %997 = vrot.lane.b32.xlu0 %v1749_v13, %s1551_s22 }
 0x17f   : > { %999 = vrot.lane.b32.xlu1 %v408_v14, %s1551_s22 }
 0x181   : > { %1100 = vrot.lane.b32.xlu0 %v1729_v62, %s1552_s23 }
 0x183   : > { %1102 = vrot.lane.b32.xlu1 %v1731_v7, %s1552_s23 }
 0x185   : > { %1104 = vrot.lane.b32.xlu0 %v1739_v8, %s1552_s23 }
 0x187   : > { %1106 = vrot.lane.b32.xlu1 %v1745_v11, %s1552_s23 }
 0x189   : > { %1108 = vrot.lane.b32.xlu0 %v1741_v9, %s1552_s23 }
 0x18b   : > { %1110 = vrot.lane.b32.xlu1 %v1747_v12, %s1552_s23 }
 0x18d   : > { %1112 = vrot.lane.b32.xlu0 %v1749_v13, %s1552_s23 }
 0x18f   : > { %1114 = vrot.lane.b32.xlu1 %v408_v14, %s1552_s23 }
 0x193   : > { %v410_v15 = vpop.permute.xlu0 %409 }
 0x194   : > { %434 = vst.msk [vmem:[%s1725_s13] sm:$0x1] %vm433_vm3, %v410_v15 }
 0x195   : > { %v412_v16 = vpop.permute.xlu1 %411 }
 0x196   : > { %435 = vst.msk [vmem:[%s1725_s13 + $0x8] sm:$0x1] %vm433_vm3, %v412_v16 }
 0x197   : > { %v526_v17 = vpop.permute.xlu0 %525 }
 0x198   : > { %549 = vst.msk [vmem:[%s1725_s13 + $0x1] sm:$0x1] %vm433_vm3, %v526_v17 }
 0x199   : > { %v528_v18 = vpop.permute.xlu1 %527 }
 0x19a   : > { %550 = vst.msk [vmem:[%s1725_s13 + $0x9] sm:$0x1] %vm433_vm3, %v528_v18 }
 0x19b   : > { %v641_v19 = vpop.permute.xlu0 %640 }
 0x19c   : > { %664 = vst.msk [vmem:[%s1725_s13 + $0x2] sm:$0x1] %vm433_vm3, %v641_v19 }
 0x19d   : > { %v643_v20 = vpop.permute.xlu1 %642 }
 0x19e   : > { %665 = vst.msk [vmem:[%s1725_s13 + $0xa] sm:$0x1] %vm433_vm3, %v643_v20 }
 0x19f   : > { %v756_v21 = vpop.permute.xlu0 %755 }
 0x1a0   : > { %779 = vst.msk [vmem:[%s1725_s13 + $0x3] sm:$0x1] %vm433_vm3, %v756_v21 }
 0x1a1   : > { %v758_v22 = vpop.permute.xlu1 %757 }
 0x1a2   : > { %780 = vst.msk [vmem:[%s1725_s13 + $0xb] sm:$0x1] %vm433_vm3, %v758_v22 }
 0x1a3   : > { %v871_v23 = vpop.permute.xlu0 %870 }
 0x1a4   : > { %894 = vst.msk [vmem:[%s1725_s13 + $0x4] sm:$0x1] %vm433_vm3, %v871_v23 }
 0x1a5   : > { %v873_v24 = vpop.permute.xlu1 %872 }
 0x1a6   : > { %895 = vst.msk [vmem:[%s1725_s13 + $0xc] sm:$0x1] %vm433_vm3, %v873_v24 }
 0x1a7   : > { %v986_v25 = vpop.permute.xlu0 %985 }
 0x1a8   : > { %1009 = vst.msk [vmem:[%s1725_s13 + $0x5] sm:$0x1] %vm433_vm3, %v986_v25 }
 0x1a9   : > { %v988_v26 = vpop.permute.xlu1 %987 }
 0x1aa   : > { %1010 = vst.msk [vmem:[%s1725_s13 + $0xd] sm:$0x1] %vm433_vm3, %v988_v26 }
 0x1ab   : > { %v414_v27 = vpop.permute.xlu0 %413 }
 0x1ac   : > { %436 = vst.msk [vmem:[%s1725_s13 + $0x10] sm:$0x1] %vm433_vm3, %v414_v27 }
 0x1ad   : > { %v416_v28 = vpop.permute.xlu1 %415 }
 0x1ae   : > { %437 = vst.msk [vmem:[%s1725_s13 + $0x18] sm:$0x1] %vm433_vm3, %v416_v28 }
 0x1af   : > { %v418_v29 = vpop.permute.xlu0 %417 }
 0x1b0   : > { %438 = vst.msk [vmem:[%s1725_s13 + $0x20] sm:$0x1] %vm433_vm3, %v418_v29 }
 0x1b1   : > { %v420_v30 = vpop.permute.xlu1 %419 }
 0x1b2   : > { %439 = vst.msk [vmem:[%s1725_s13 + $0x28] sm:$0x1] %vm433_vm3, %v420_v30 }
 0x1b3   : > { %v530_v32 = vpop.permute.xlu0 %529 }
 0x1b4   : > { %551 = vst.msk [vmem:[%s1725_s13 + $0x11] sm:$0x1] %vm433_vm3, %v530_v32 }
 0x1b5   : > { %v532_v33 = vpop.permute.xlu1 %531 }
 0x1b6   : > { %552 = vst.msk [vmem:[%s1725_s13 + $0x19] sm:$0x1] %vm433_vm3, %v532_v33 }
 0x1b7   : > { %v534_v34 = vpop.permute.xlu0 %533 }
 0x1b8   : > { %553 = vst.msk [vmem:[%s1725_s13 + $0x21] sm:$0x1] %vm433_vm3, %v534_v34 }
 0x1b9   : > { %v536_v35 = vpop.permute.xlu1 %535 }
 0x1ba   : > { %554 = vst.msk [vmem:[%s1725_s13 + $0x29] sm:$0x1] %vm433_vm3, %v536_v35 }
 0x1bb   : > { %v645_v36 = vpop.permute.xlu0 %644 }
 0x1bc   : > { %666 = vst.msk [vmem:[%s1725_s13 + $0x12] sm:$0x1] %vm433_vm3, %v645_v36 }
 0x1bd   : > { %v647_v37 = vpop.permute.xlu1 %646 }
 0x1be   : > { %667 = vst.msk [vmem:[%s1725_s13 + $0x1a] sm:$0x1] %vm433_vm3, %v647_v37 }
 0x1bf   : > { %v649_v38 = vpop.permute.xlu0 %648 }
 0x1c0   : > { %668 = vst.msk [vmem:[%s1725_s13 + $0x22] sm:$0x1] %vm433_vm3, %v649_v38 }
 0x1c1   : > { %v651_v39 = vpop.permute.xlu1 %650 }
 0x1c2   : > { %669 = vst.msk [vmem:[%s1725_s13 + $0x2a] sm:$0x1] %vm433_vm3, %v651_v39 }
 0x1c3   : > { %v760_v40 = vpop.permute.xlu0 %759 }
 0x1c4   : > { %781 = vst.msk [vmem:[%s1725_s13 + $0x13] sm:$0x1] %vm433_vm3, %v760_v40 }
 0x1c5   : > { %v762_v41 = vpop.permute.xlu1 %761 }
 0x1c6   : > { %782 = vst.msk [vmem:[%s1725_s13 + $0x1b] sm:$0x1] %vm433_vm3, %v762_v41 }
 0x1c7   : > { %v764_v42 = vpop.permute.xlu0 %763 }
 0x1c8   : > { %783 = vst.msk [vmem:[%s1725_s13 + $0x23] sm:$0x1] %vm433_vm3, %v764_v42 }
 0x1c9   : > { %v766_v43 = vpop.permute.xlu1 %765 }
 0x1ca   : > { %784 = vst.msk [vmem:[%s1725_s13 + $0x2b] sm:$0x1] %vm433_vm3, %v766_v43 }
 0x1cb   : > { %v875_v44 = vpop.permute.xlu0 %874 }
 0x1cc   : > { %896 = vst.msk [vmem:[%s1725_s13 + $0x14] sm:$0x1] %vm433_vm3, %v875_v44 }
 0x1cd   : > { %v877_v45 = vpop.permute.xlu1 %876 }
 0x1ce   : > { %897 = vst.msk [vmem:[%s1725_s13 + $0x1c] sm:$0x1] %vm433_vm3, %v877_v45 }
 0x1cf   : > { %v879_v46 = vpop.permute.xlu0 %878 }
 0x1d0   : > { %898 = vst.msk [vmem:[%s1725_s13 + $0x24] sm:$0x1] %vm433_vm3, %v879_v46 }
 0x1d1   : > { %v881_v47 = vpop.permute.xlu1 %880 }
 0x1d2   : > { %899 = vst.msk [vmem:[%s1725_s13 + $0x2c] sm:$0x1] %vm433_vm3, %v881_v47 }
 0x1d3   : > { %v990_v48 = vpop.permute.xlu0 %989 }
 0x1d4   : > { %1011 = vst.msk [vmem:[%s1725_s13 + $0x15] sm:$0x1] %vm433_vm3, %v990_v48 }
 0x1d5   : > { %v992_v49 = vpop.permute.xlu1 %991 }
 0x1d6   : > { %1012 = vst.msk [vmem:[%s1725_s13 + $0x1d] sm:$0x1] %vm433_vm3, %v992_v49 }
 0x1d7   : > { %v994_v50 = vpop.permute.xlu0 %993 }
 0x1d8   : > { %1013 = vst.msk [vmem:[%s1725_s13 + $0x25] sm:$0x1] %vm433_vm3, %v994_v50 }
 0x1d9   : > { %v996_v51 = vpop.permute.xlu1 %995 }
 0x1da   : > { %1014 = vst.msk [vmem:[%s1725_s13 + $0x2d] sm:$0x1] %vm433_vm3, %v996_v51 }
 0x1db   : > { %v422_v52 = vpop.permute.xlu0 %421 }
 0x1dc   : > { %440 = vst.msk [vmem:[%s1725_s13 + $0x30] sm:$0x1] %vm433_vm3, %v422_v52 }
 0x1dd   : > { %v424_v53 = vpop.permute.xlu1 %423 }
 0x1de   : > { %441 = vst.msk [vmem:[%s1725_s13 + $0x38] sm:$0x1] %vm433_vm3, %v424_v53 }
 0x1df   : > { %v538_v54 = vpop.permute.xlu0 %537 }
 0x1e0   : > { %555 = vst.msk [vmem:[%s1725_s13 + $0x31] sm:$0x1] %vm433_vm3, %v538_v54 }
 0x1e1   : > { %v540_v55 = vpop.permute.xlu1 %539 }
 0x1e2   : > { %556 = vst.msk [vmem:[%s1725_s13 + $0x39] sm:$0x1] %vm433_vm3, %v540_v55 }
 0x1e3   : > { %v653_v56 = vpop.permute.xlu0 %652 }
 0x1e4   : > { %670 = vst.msk [vmem:[%s1725_s13 + $0x32] sm:$0x1] %vm433_vm3, %v653_v56 }
 0x1e5   : > { %v655_v57 = vpop.permute.xlu1 %654 }
 0x1e6   : > { %671 = vst.msk [vmem:[%s1725_s13 + $0x3a] sm:$0x1] %vm433_vm3, %v655_v57 }
 0x1e7   : > { %v768_v31 = vpop.permute.xlu0 %767 }
 0x1e8   : > { %785 = vst.msk [vmem:[%s1725_s13 + $0x33] sm:$0x1] %vm433_vm3, %v768_v31 }
 0x1e9   : > { %v770_v58 = vpop.permute.xlu1 %769 }
 0x1ea   : > { %786 = vst.msk [vmem:[%s1725_s13 + $0x3b] sm:$0x1] %vm433_vm3, %v770_v58 }
 0x1eb   : > { %v883_v59 = vpop.permute.xlu0 %882 }
 0x1ec   : > { %900 = vst.msk [vmem:[%s1725_s13 + $0x34] sm:$0x1] %vm433_vm3, %v883_v59 }
 0x1ed   : > { %v885_v60 = vpop.permute.xlu1 %884 }
 0x1ee   : > { %901 = vst.msk [vmem:[%s1725_s13 + $0x3c] sm:$0x1] %vm433_vm3, %v885_v60 }
 0x1ef   : > { %v998_v61 = vpop.permute.xlu0 %997 }
 0x1f0   : > { %1015 = vst.msk [vmem:[%s1725_s13 + $0x35] sm:$0x1] %vm433_vm3, %v998_v61 }
 0x1f1   : > { %v1000_v63 = vpop.permute.xlu1 %999 }
 0x1f2   : > { %1016 = vst.msk [vmem:[%s1725_s13 + $0x3d] sm:$0x1] %vm433_vm3, %v1000_v63 }
 0x1f3   : > { %v1101_v0 = vpop.permute.xlu0 %1100 }
 0x1f4   : > { %1124 = vst.msk [vmem:[%s1725_s13 + $0x6] sm:$0x1] %vm433_vm3, %v1101_v0 }
 0x1f5   : > { %v1103_v2 = vpop.permute.xlu1 %1102 }
 0x1f6   : > { %1125 = vst.msk [vmem:[%s1725_s13 + $0xe] sm:$0x1] %vm433_vm3, %v1103_v2 }
 0x1f7   : > { %v1105_v3 = vpop.permute.xlu0 %1104 }
 0x1f8   : > { %1126 = vst.msk [vmem:[%s1725_s13 + $0x16] sm:$0x1] %vm433_vm3, %v1105_v3 }
 0x1f9   : > { %v1107_v4 = vpop.permute.xlu1 %1106 }
 0x1fa   : > { %1127 = vst.msk [vmem:[%s1725_s13 + $0x1e] sm:$0x1] %vm433_vm3, %v1107_v4 }
 0x1fb   : > { %v1109_v62 = vpop.permute.xlu0 %1108 }
 0x1fc   : > { %1128 = vst.msk [vmem:[%s1725_s13 + $0x26] sm:$0x1] %vm433_vm3, %v1109_v62 }
 0x1fd   : > { %v1111_v5 = vpop.permute.xlu1 %1110 }
 0x1fe   : > { %1129 = vst.msk [vmem:[%s1725_s13 + $0x2e] sm:$0x1] %vm433_vm3, %v1111_v5 }
 0x1ff   : > { %v1113_v1 = vpop.permute.xlu0 %1112 }
 0x200   : > { %1130 = vst.msk [vmem:[%s1725_s13 + $0x36] sm:$0x1] %vm433_vm3, %v1113_v1 }
 0x201   : > { %v1115_v6 = vpop.permute.xlu1 %1114 }
 0x202   : > { %1131 = vst.msk [vmem:[%s1725_s13 + $0x3e] sm:$0x1] %vm433_vm3, %v1115_v6 }
 0x203   : > { %1457 = shalt.err (!%p1454_p4)
}
 0x204   : > { %s1458_s4 = scalar_lea.hbm %s1967_s28, 1024  ;;  %s1462_s13 = scalar_lea.hbm %s2019_s1, 2048 }
 0x205   : > { %p1459_p7 = scmp.ne.s32.totalorder %s1967_s28, %s1458_s4  ;;  %p1463_p13 = scmp.lt.u32.totalorder %s1967_s28, %s2019_s1 }
 0x206   : > { %p1464_p1 = scmp.lt.u32.totalorder %s1462_s13, %s1458_s4  ;;  %p1466_p5 = scmp.lt.u32.totalorder %s1458_s4, %s1967_s28 }
 0x207   : > { %p1460_p8 = pnand %p1459_p7, %p2030_p6 }
 0x208   : > { %p1465_p0 = por %p1464_p1, %p1463_p13 }
 0x209   : > { %p1461_p11 = pneg %p1460_p8 }
 0x20a   : > { %p1467_p9 = por %p1466_p5, %p1465_p0 }
 0x20c   : > { %p1468_p10 = pnand %p1467_p9, %p1461_p11 }
 0x20e   : > { %1471 = shalt.err (!%p1468_p10)
}
 0x20f   : > { %s1554_s19 = smov 128   ;;  %s1555_s20 = smov 256  }
 0x210   : > { %s1556_s21 = smov 8  }
 0x211   : > { %1292 = dma.vmem_to_hbm [thread:$0]  (%p2030_p6), %s1969_s25, 1024, %s1967_s28, %s1977_s10, %s1554_s19, %s1555_s20, %s1556_s21  }
 0x212 PF: > { %p1304_p12 = scmp.ge.s32.totalorder %s1510_s9, 2  ;;  %s1227_s22 = sand.u32 1, %s1498_s6  }
 0x213   : > { %p2031_p2 = scmp.ne.s32.totalorder %s2024_s17, 0  ;;  %s1228_s23 = scalar_lea.sflag [#allocation5], %s1227_s22 }
 0x215   : > { %p1299_p3 = pnand %p1304_p12, %p2031_p2 }
 0x217   : > { %1493 = dma.done.wait (!%p1299_p3), %s1228_s23, 1024  }
 0x218   : > { %1495 = vsyncadd (!%p1299_p3), %s1228_s23, 4294966272  ;;  %p12_p4 = scmp.ge.s32.totalorder %s1592_s12, 4   ;;  %s2032_s6 = smov %s1502_s7 }
 0x219   : > { %s2033_s7 = smov %s1506_s8  ;;  %s2034_s8 = smov %s1603_s15 }
 0x21a   : > { %s2035_s9 = smov %s1592_s12  ;;  %14 = sbr.rel (!%p12_p4) target bundleno = 4 (0x4), region = 61 }
 0x221   :  { %1233 = vsyncpa [#allocation4], 1 }
 0x222   :  { %1235 = vsyncpa [#allocation4 + $0x1], 1 }
 0x223   :  { %1236 = vsyncpa [#allocation5], 1 }
 0x224   :  { %1238 = vsyncpa [#allocation5 + $0x1], 1 }

</bundles_post_ra>
